<compile_context>
chip_gen: v5e
topology: v5e:2x2
jax: 0.10.0
libtpu: 0.0.40
codegen_flags: <defaults>
</compile_context>

<pallas_src>
import functools

import jax
import jax.numpy as jnp
from jax import lax
from jax.experimental import pallas as pl
from jax.experimental.pallas import tpu as pltpu

_NEG_INF = -1e30  # finite "minus infinity": avoids inf-inf NaNs on masked lanes


def _round_up(x, m):
    return ((x + m - 1) // m) * m


def _lse_kernel(logits_ref, lse_ref, m_ref, s_ref, *, needs_col_mask, last_block_cols):
    j = pl.program_id(1)          # class-block index ("arbitrary", reduction axis, last)
    nj = pl.num_programs(1)

    @pl.when(j == 0)
    def _init():
        m_ref[...] = jnp.full(m_ref.shape, _NEG_INF, dtype=m_ref.dtype)
        s_ref[...] = jnp.zeros_like(s_ref)

    # Stream native dtype (bf16/f32) from HBM; upcast in-register only.
    x = logits_ref[...].astype(jnp.float32)                      # (tn, tc)

    def _update(xt):
        m_old = m_ref[...]
        m_new = jnp.maximum(m_old, jnp.max(xt, axis=-1, keepdims=True))
        s_ref[...] = (s_ref[...] * jnp.exp(m_old - m_new)
                      + jnp.sum(jnp.exp(xt - m_new), axis=-1, keepdims=True))
        m_ref[...] = m_new

    if needs_col_mask:
        # Only the (statically known) partial last class block pays for lane masking.
        @pl.when(j == nj - 1)
        def _last_block():
            iota = lax.broadcasted_iota(jnp.int32, x.shape, 1)   # block-local column ids
            _update(jnp.where(iota < last_block_cols, x, _NEG_INF))

        @pl.when(j < nj - 1)
        def _full_block():
            _update(x)
    else:
        _update(x)

    @pl.when(j == nj - 1)
    def _finalize():
        lse_ref[...] = m_ref[...] + jnp.log(s_ref[...])


def cross_entropy(outputs, labels, *, max_block_classes=None):
    """Equivalent of nn.CrossEntropyLoss()(outputs, labels) (mean reduction).

    outputs: (N, C) float logits (f32 or bf16; streamed in native dtype)
    labels:  (N,)   integer class indices in [0, C)
    returns: scalar float32 mean negative log-likelihood
    """
    n, c = outputs.shape
    ebytes = jnp.dtype(outputs.dtype).itemsize

    # VMEM-capacity-aware tiling: bigger class blocks on the 128-MiB parts (v5e/v6e),
    # conservative 4-MiB buffers on 64-MiB v7x.
    try:
        vmem_bytes = int(pltpu.get_tpu_info().vmem_capacity_bytes)
    except Exception:  # pragma: no cover - conservative fallback
        vmem_bytes = 64 * 1024 * 1024
    big_vmem = vmem_bytes >= 100 * 1024 * 1024
    target_buf_bytes = (8 if big_vmem else 4) * 1024 * 1024

    # Row block: aim for >=2 row blocks (megacore on v7x) while respecting the
    # sublane alignment of the streamed dtype (f32: 8, bf16: 16).
    row_align = 8 * max(1, 4 // ebytes)
    if n <= row_align:
        tn = n                       # block equals full dim -> always legal
    else:
        tn = min(256, _round_up(-(-n // 2), row_align))

    # Class block: multiple of 128 (or full C), sized to the per-buffer target.
    tc_cap = max(128, (target_buf_bytes // (tn * ebytes)) // 128 * 128)
    if max_block_classes is not None:
        tc_cap = min(tc_cap, max_block_classes)
    tc = c if c <= tc_cap else tc_cap

    grid = (pl.cdiv(n, tn), pl.cdiv(c, tc))
    needs_col_mask = (c % tc) != 0
    last_block_cols = c - (grid[1] - 1) * tc

    kernel = functools.partial(_lse_kernel,
                               needs_col_mask=needs_col_mask,
                               last_block_cols=last_block_cols)

    lse = pl.pallas_call(
        kernel,
        out_shape=jax.ShapeDtypeStruct((n, 1), jnp.float32),
        grid_spec=pltpu.PrefetchScalarGridSpec(
            num_scalar_prefetch=0,
            grid=grid,
            in_specs=[
                pl.BlockSpec((tn, tc), lambda i, j: (i, j)),   # logits tile (native dtype)
            ],
            out_specs=pl.BlockSpec((tn, 1), lambda i, j: (i, 0)),
            scratch_shapes=[
                pltpu.VMEM((tn, 1), jnp.float32),   # running row max
                pltpu.VMEM((tn, 1), jnp.float32),   # running scaled exp-sum
            ],
        ),
        compiler_params=pltpu.CompilerParams(
            dimension_semantics=("parallel", "arbitrary"),
            vmem_limit_bytes=(64 if big_vmem else 32) * 1024 * 1024,
        ),
    )(outputs)

    # True-class pick as an N-element gather in the wrapper (negligible HBM traffic).
    x32 = outputs.astype(jnp.float32)
    picked = jnp.take_along_axis(x32, labels.astype(jnp.int32)[:, None], axis=-1)  # (n, 1)
    return jnp.mean(lse - picked)


def _ref_loss(outputs, labels):
    x = outputs.astype(jnp.float32)
    lse = jax.nn.logsumexp(x, axis=-1)
    picked = jnp.take_along_axis(x, labels[:, None].astype(jnp.int32), axis=-1)[:, 0]
    return jnp.mean(lse - picked)


if __name__ == "__main__":
    key = jax.random.PRNGKey(0)
    ks = jax.random.split(key, 6)

    def _check(x, y, **kw):
        loss = cross_entropy(x, y, **kw)
        jax.block_until_ready(loss)
        ref = _ref_loss(x, y)
        assert jnp.allclose(loss, ref, atol=1e-5, rtol=1e-5), (loss, ref)

    # 1) Tiny single-block case.
    n1, c1 = 8, 32
    x1 = jax.random.normal(ks[0], (n1, c1), dtype=jnp.float32)
    y1 = jax.random.randint(ks[1], (n1,), 0, c1, dtype=jnp.int32)
    _check(x1, y1)

    # 2) Multiple row blocks + multiple class blocks with a partial (masked) last block.
    n2, c2 = 50, 400
    x2 = jax.random.normal(ks[2], (n2, c2), dtype=jnp.float32)
    y2 = jax.random.randint(ks[3], (n2,), 0, c2, dtype=jnp.int32)
    _check(x2, y2, max_block_classes=128)

    # 3) bf16 logits streamed in native dtype (upcast only in-register).
    n3, c3 = 24, 256
    x3 = jax.random.normal(ks[4], (n3, c3), dtype=jnp.float32).astype(jnp.bfloat16)
    y3 = jax.random.randint(ks[5], (n3,), 0, c3, dtype=jnp.int32)
    _check(x3, y3, max_block_classes=128)

    print("KERNEL_OK")
</pallas_src>

<mosaic_0001>
module attributes {stable_mosaic.version = 11 : i64} {
  func.func @_lse_kernel(%arg0: i32, %arg1: i32, %arg2: memref<8x32xf32, #tpu.memory_space<vmem>>, %arg3: memref<8x1xf32, #tpu.memory_space<vmem>>, %arg4: memref<8x1xf32, #tpu.memory_space<vmem>>, %arg5: memref<8x1xf32, #tpu.memory_space<vmem>>) attributes {dimension_semantics = [#tpu.dimension_semantics<parallel>, #tpu.dimension_semantics<arbitrary>], iteration_bounds = array<i64: 1, 1>, scalar_prefetch = 0 : i64, scratch_operands = 2 : i64, tpu.core_type = #tpu.core_type<tc>, window_params = [{transform_indices = @transform_0, window_bounds = array<i64: 8, 32>}, {transform_indices = @transform_1, window_bounds = array<i64: 8, 1>}]} {
    %c0_i32 = arith.constant 0 : i32
    %0 = arith.cmpi eq, %arg1, %c0_i32 : i32
    %1 = arith.extui %0 : i1 to i32
    %c0_i32_0 = arith.constant 0 : i32
    %2 = arith.cmpi ne, %1, %c0_i32_0 : i32
    scf.if %2 {
      %cst_13 = arith.constant -1.000000e+30 : f32
      %23 = vector.broadcast %cst_13 : f32 to vector<8x1xf32>
      %c0_14 = arith.constant 0 : index
      %c0_15 = arith.constant 0 : index
      %24 = vector.load %arg4[%c0_14, %c0_15] : memref<8x1xf32, #tpu.memory_space<vmem>>, vector<8x1xf32>
      tpu.vector_store %arg4[%c0_14, %c0_15], %23 {strides = array<i32>} : memref<8x1xf32, #tpu.memory_space<vmem>>, vector<8x1xf32>,
      %cst_16 = arith.constant 0.000000e+00 : f32
      %25 = vector.broadcast %cst_16 : f32 to vector<8x1xf32>
      %c0_17 = arith.constant 0 : index
      %c0_18 = arith.constant 0 : index
      %26 = vector.load %arg5[%c0_17, %c0_18] : memref<8x1xf32, #tpu.memory_space<vmem>>, vector<8x1xf32>
      tpu.vector_store %arg5[%c0_17, %c0_18], %25 {strides = array<i32>} : memref<8x1xf32, #tpu.memory_space<vmem>>, vector<8x1xf32>,
    } else {
    }
    %c0 = arith.constant 0 : index
    %c0_1 = arith.constant 0 : index
    %3 = vector.load %arg2[%c0, %c0_1] : memref<8x32xf32, #tpu.memory_space<vmem>>, vector<8x32xf32>
    %c0_2 = arith.constant 0 : index
    %c0_3 = arith.constant 0 : index
    %4 = vector.load %arg4[%c0_2, %c0_3] : memref<8x1xf32, #tpu.memory_space<vmem>>, vector<8x1xf32>
    %cst = arith.constant dense<0xFF800000> : vector<8xf32>
    %5 = vector.multi_reduction <maximumf>, %3, %cst [1] : vector<8x32xf32> to vector<8xf32>
    %6 = vector.shape_cast %5 : vector<8xf32> to vector<8x1xf32>
    %7 = arith.maximumf %4, %6 : vector<8x1xf32>
    %c0_4 = arith.constant 0 : index
    %c0_5 = arith.constant 0 : index
    %8 = vector.load %arg5[%c0_4, %c0_5] : memref<8x1xf32, #tpu.memory_space<vmem>>, vector<8x1xf32>
    %9 = arith.subf %4, %7 : vector<8x1xf32>
    %10 = math.exp %9 : vector<8x1xf32>
    %11 = arith.mulf %8, %10 : vector<8x1xf32>
    %12 = vector.broadcast %7 : vector<8x1xf32> to vector<8x32xf32>
    %13 = arith.subf %3, %12 : vector<8x32xf32>
    %14 = math.exp %13 : vector<8x32xf32>
    %cst_6 = arith.constant dense<0.000000e+00> : vector<8xf32>
    %15 = vector.multi_reduction <add>, %14, %cst_6 [1] : vector<8x32xf32> to vector<8xf32>
    %16 = vector.shape_cast %15 : vector<8xf32> to vector<8x1xf32>
    %17 = arith.addf %11, %16 : vector<8x1xf32>
    %c0_7 = arith.constant 0 : index
    %c0_8 = arith.constant 0 : index
    %18 = vector.load %arg5[%c0_7, %c0_8] : memref<8x1xf32, #tpu.memory_space<vmem>>, vector<8x1xf32>
    tpu.vector_store %arg5[%c0_7, %c0_8], %17 {strides = array<i32>} : memref<8x1xf32, #tpu.memory_space<vmem>>, vector<8x1xf32>,
    %c0_9 = arith.constant 0 : index
    %c0_10 = arith.constant 0 : index
    %19 = vector.load %arg4[%c0_9, %c0_10] : memref<8x1xf32, #tpu.memory_space<vmem>>, vector<8x1xf32>
    tpu.vector_store %arg4[%c0_9, %c0_10], %7 {strides = array<i32>} : memref<8x1xf32, #tpu.memory_space<vmem>>, vector<8x1xf32>,
    %c0_i32_11 = arith.constant 0 : i32
    %20 = arith.cmpi eq, %arg1, %c0_i32_11 : i32
    %21 = arith.extui %20 : i1 to i32
    %c0_i32_12 = arith.constant 0 : i32
    %22 = arith.cmpi ne, %21, %c0_i32_12 : i32
    scf.if %22 {
      %c0_13 = arith.constant 0 : index
      %c0_14 = arith.constant 0 : index
      %23 = vector.load %arg4[%c0_13, %c0_14] : memref<8x1xf32, #tpu.memory_space<vmem>>, vector<8x1xf32>
      %c0_15 = arith.constant 0 : index
      %c0_16 = arith.constant 0 : index
      %24 = vector.load %arg5[%c0_15, %c0_16] : memref<8x1xf32, #tpu.memory_space<vmem>>, vector<8x1xf32>
      %25 = math.log %24 : vector<8x1xf32>
      %26 = arith.addf %23, %25 : vector<8x1xf32>
      %c0_17 = arith.constant 0 : index
      %c0_18 = arith.constant 0 : index
      %27 = vector.load %arg3[%c0_17, %c0_18] : memref<8x1xf32, #tpu.memory_space<vmem>>, vector<8x1xf32>
      tpu.vector_store %arg3[%c0_17, %c0_18], %26 {strides = array<i32>} : memref<8x1xf32, #tpu.memory_space<vmem>>, vector<8x1xf32>,
    } else {
    }
    return
  }
  func.func @transform_0(%arg0: i32, %arg1: i32) -> (i32, i32) {
    %c0_i32 = arith.constant 0 : i32
    return %arg0, %arg1 : i32, i32
  }
  func.func @transform_1(%arg0: i32, %arg1: i32) -> (i32, i32) {
    %c0_i32 = arith.constant 0 : i32
    %c0_i32_0 = arith.constant 0 : i32
    return %arg0, %c0_i32 : i32, i32
  }
}

</mosaic_0001>

<bundles_post_ra>
// kernel: tpu_custom_call.1
= control target key start
LH: loop header
LB: loop body
LE: loop exit
PB: predicated region body
PF: predicated region fallthrough
CT: control target
= control target key end

     0   :  { %6 = vsyncpa [#allocation5], 0  ;;  %s107_s9 = smov [#allocation4]   ;;  %s134_s0 = inlined_call_operand.hbm [shape: f32[8,32], index: 0, kind: input, shape index: {}]   ;;  %s135_s1 = inlined_call_operand.vmem [shape: f32[8,1], index: 1, kind: output, shape index: {}]  }
   0x1   :  { %s12_s8 = sshll.u32 %s134_s0, 4  ;;  %s14_s10 = sshll.u32 %s107_s9, 4  ;;  %s13_s8 = int_to_ptr.hbm [resolvable:$true] %s12_s8  ;;  %s15_s10 = int_to_ptr.vmem [resolvable:$true] %s14_s10 }
   0x2   :  { %17 = dma.hbm_to_vmem [thread:$0]  %s13_s8, 128, %s15_s10, [#allocation5]  }
   0x3   :  { %105 = dma.done.wait [#allocation5], 128  }
   0x4   :  { %106 = vsyncadd [#allocation5], 4294967168  ;;  %vm26_vm0 = vcmask 7168   ;;  %v108_v0 = vmov -1e+30   ;;  %vm31_vm1 = vcmask 261120  }
   0x5   :  { %27 = vst.msk [vmem:[#allocation2] sm:$0xff] %vm26_vm0, %v108_v0  ;;  %v29_v1 = vld [vmem:[#allocation4] sm:$0xff]  ;;  %v109_v3 = vmov 0   ;;  %v110_v4 = vmov 0.0  }
   0x6   :  { %v32_v2 = vsel %vm31_vm1, %v29_v1, -inf  ;;  %74 = vset.pattern.permute.xlu0 %v109_v3  ;;  %28 = vst.msk [vmem:[#allocation3] sm:$0xff] %vm26_vm0, %v110_v4 }
   0x7   :  { %33 = vmax.xlane.f32.xlu0 %v32_v2 }
   0xc   :  { %v30_v5 = vld [vmem:[#allocation2] sm:$0xff] }
   0xd   :  { %v36_v16 = vld [vmem:[#allocation3] sm:$0xff] }
  0x7a   :  { %v34_v6 = vpop.xlane.xlu0 %33 }
  0x7b   :  { %v35_v7 = vmax.f32 %v30_v5, %v34_v6 }
  0x7d   :  { %v37_v8 = vsub.f32 %v30_v5, %v35_v7  ;;  %55 = vst.msk [vmem:[#allocation2] sm:$0xff] %vm26_vm0, %v35_v7  ;;  %43 = vperm.xlu0 %74, %v35_v7  }
  0x7f   :  { %v38_v14 = vmul.f32 1.442695, %v37_v8 }
  0x84   :  { %v59_v23 = vld [vmem:[#allocation2] sm:$0xff] }
  0xef   :  { %v44_v9 = vpop.permute.xlu0 %43 }
  0xf0   :  { %v46_v10 = vsub.f32 %v29_v1, %v44_v9 }
  0xf2   :  { %v47_v11 = vmul.f32 1.442695, %v46_v10 }
  0xf4   :  { %75 = vpow2.f32 %v47_v11 }
  0xf5   :  { %77 = vpow2.f32 %v38_v14 }
  0xfa   :  { %v76_v12 = vpop.eup %75 }
  0xfb   :  { %v49_v13 = vsel %vm31_vm1, %v76_v12, 0.0  ;;  %v78_v15 = vpop.eup %77 }
  0xfc   :  { %50 = vadd.xlane.f32.xlu1 %v49_v13  ;;  %v40_v17 = vmul.f32 %v78_v15, %v36_v16 }
 0x16f   :  { %v51_v18 = vpop.xlane.xlu1 %50 }
 0x170   :  { %v52_v19 = vadd.f32 %v51_v18, %v40_v17 }
 0x172   :  { %54 = vst.msk [vmem:[#allocation3] sm:$0xff] %vm26_vm0, %v52_v19 }
 0x179   :  { %v60_v20 = vld [vmem:[#allocation3] sm:$0xff] }
 0x17a   :  { %79 = vlog2.f32 %v60_v20 }
 0x180   :  { %v80_v21 = vpop.eup %79 }
 0x181   :  { %v62_v22 = vmul.f32 0.6931472, %v80_v21 }
 0x183   :  { %v63_v24 = vadd.f32 %v62_v22, %v59_v23 }
 0x185   :  { %64 = vst.msk [vmem:[%s135_s1] sm:$0xff] %vm26_vm0, %v63_v24 }
 0x186   :  { %69 = vsyncpa [#allocation5], 1 }

</bundles_post_ra>
